<compile_context>
chip_gen: v5e
topology: v5e:2x2
jax: 0.10.0
libtpu: 0.0.40
codegen_flags: <defaults>
</compile_context>

<pallas_src>
import jax
import jax.numpy as jnp
from jax.experimental import pallas as pl
from jax.experimental.pallas import tpu as pltpu


# ----------------------------------------------------------------------------
# Fused Pallas kernel: whole GCN forward in one invocation (tiny shapes => one
# full-array VMEM block per operand, no grid).
# ----------------------------------------------------------------------------
def _fused_gcn_kernel(adj_ref, pool_ref, x_ref,
                      w1_ref, b1_ref, w2_ref, b2_ref,
                      w3l_ref, bfold_ref, o_ref):
    adj = adj_ref[...]                       # bf16 [Np, Np]; loaded once, reused 3x

    # ----- GCN layer 1: relu(A_hat @ (X @ W1) + b1) -----
    xw = jnp.dot(x_ref[...], w1_ref[...], preferred_element_type=jnp.float32)
    h = jnp.dot(adj, xw.astype(jnp.bfloat16), preferred_element_type=jnp.float32)
    h = jnp.maximum(h + b1_ref[...], 0.0).astype(jnp.bfloat16)

    # ----- GCN layer 2: relu(A_hat @ (H1 @ W2) + b2) -----
    hw = jnp.dot(h, w2_ref[...], preferred_element_type=jnp.float32)
    h = jnp.dot(adj, hw.astype(jnp.bfloat16), preferred_element_type=jnp.float32)
    h = jnp.maximum(h + b2_ref[...], 0.0).astype(jnp.bfloat16)

    # ----- GCN layer 3 folded into final Linear (no ReLU between them):
    #       z = A_hat @ (H2 @ (W3 @ W_lin)) -----
    hw = jnp.dot(h, w3l_ref[...], preferred_element_type=jnp.float32)
    z = jnp.dot(adj, hw.astype(jnp.bfloat16), preferred_element_type=jnp.float32)

    # ----- global_mean_pool + folded bias + ReLU -----
    out = jnp.dot(pool_ref[...], z.astype(jnp.bfloat16),
                  preferred_element_type=jnp.float32)
    out = jnp.maximum(out + bfold_ref[...], 0.0)
    o_ref[...] = out.astype(o_ref.dtype)


# ----------------------------------------------------------------------------
# Plain-JAX glue (dense normalized adjacency + pooling matrix).
# NOTE: if edge_index/batch are static across calls, cache these outside jit.
# ----------------------------------------------------------------------------
def build_norm_adj(edge_index, num_nodes):
    src, dst = edge_index[0], edge_index[1]
    adj = jnp.zeros((num_nodes, num_nodes), jnp.float32)
    # PyG aggregates messages at dst from src; duplicate edges sum (like gcn_norm).
    adj = adj.at[dst, src].add(1.0)
    adj = adj + jnp.eye(num_nodes, dtype=jnp.float32)          # add self loops
    deg = jnp.sum(adj, axis=1)
    d_inv_sqrt = jnp.where(deg > 0, 1.0 / jnp.sqrt(deg), 0.0)
    return d_inv_sqrt[:, None] * adj * d_inv_sqrt[None, :]


def build_pool_matrix(batch, num_graphs, num_nodes):
    one_hot = (batch[None, :] == jnp.arange(num_graphs)[:, None]).astype(jnp.float32)
    counts = jnp.maximum(jnp.sum(one_hot, axis=1, keepdims=True), 1.0)
    return one_hot / counts                                     # [G, N]


# ----------------------------------------------------------------------------
# Padding helpers
# ----------------------------------------------------------------------------
def _round_up(x, m):
    return (x + m - 1) // m * m


def _pad2d(a, rows, cols):
    return jnp.zeros((rows, cols), a.dtype).at[:a.shape[0], :a.shape[1]].set(a)


# ----------------------------------------------------------------------------
# Full GCN forward (single fused pallas_call)
# ----------------------------------------------------------------------------
def gcn_forward(params, x, edge_index, batch, num_graphs):
    n, f_in = x.shape
    hidden = params["w1"].shape[1]

    # Lane-dense padded sizes.
    n_pad = _round_up(max(n, 8), 128)
    g_pad = _round_up(max(num_graphs, 1), 8)
    f_pad = _round_up(f_in, 128)
    h_pad = _round_up(hidden, 128)
    o_pad = 128                                    # real output width is 1

    adj = build_norm_adj(edge_index, n)
    pool = build_pool_matrix(batch, num_graphs, n)

    # Fold layer 3 into the final Linear (no ReLU between them).
    w3_lin = params["w3"] @ params["w_lin"]                          # [H, 1]
    b_fold = params["b3"] @ params["w_lin"] + params["b_lin"]        # [1]

    bf16 = jnp.bfloat16
    adj_p = _pad2d(adj, n_pad, n_pad).astype(bf16)
    pool_p = _pad2d(pool, g_pad, n_pad).astype(bf16)
    x_p = _pad2d(x, n_pad, f_pad).astype(bf16)
    w1_p = _pad2d(params["w1"], f_pad, h_pad).astype(bf16)
    w2_p = _pad2d(params["w2"], h_pad, h_pad).astype(bf16)
    w3l_p = _pad2d(w3_lin, h_pad, o_pad).astype(bf16)
    b1_p = _pad2d(params["b1"].reshape(1, -1), 1, h_pad)             # f32
    b2_p = _pad2d(params["b2"].reshape(1, -1), 1, h_pad)             # f32
    bfold_p = _pad2d(b_fold.reshape(1, -1), 1, o_pad)                # f32

    flops = 2 * (n_pad * f_pad * h_pad + n_pad * n_pad * h_pad       # layer 1
                 + n_pad * h_pad * h_pad + n_pad * n_pad * h_pad     # layer 2
                 + n_pad * h_pad * o_pad + n_pad * n_pad * o_pad     # layer 3 folded
                 + g_pad * n_pad * o_pad)                            # pooling
    bytes_accessed = (2 * (adj_p.size + pool_p.size + x_p.size
                           + w1_p.size + w2_p.size + w3l_p.size)
                      + 4 * (b1_p.size + b2_p.size + bfold_p.size)
                      + 4 * g_pad * o_pad)

    vmem_spec = pl.BlockSpec(memory_space=pltpu.MemorySpace.VMEM)
    out_pad = pl.pallas_call(
        _fused_gcn_kernel,
        out_shape=jax.ShapeDtypeStruct((g_pad, o_pad), jnp.float32),
        in_specs=[vmem_spec] * 9,
        out_specs=vmem_spec,
        compiler_params=pltpu.CompilerParams(
            vmem_limit_bytes=32 * 1024 * 1024),
        cost_estimate=pl.CostEstimate(
            flops=flops, transcendentals=0, bytes_accessed=bytes_accessed),
    )(adj_p, pool_p, x_p, w1_p, b1_p, w2_p, b2_p, w3l_p, bfold_p)

    # F.dropout(p=0.25, training=False) is the identity in eval mode.
    # TODO(synk): training-mode dropout (pltpu.prng_random_bits mask) not needed for inference.
    return out_pad[:num_graphs, :1]


# ----------------------------------------------------------------------------
# Pure-JAX reference (f32) for a correctness sanity check.
# ----------------------------------------------------------------------------
def gcn_forward_ref(params, x, edge_index, batch, num_graphs):
    adj = build_norm_adj(edge_index, x.shape[0])
    pool = build_pool_matrix(batch, num_graphs, x.shape[0])
    h = jnp.maximum(adj @ (x @ params["w1"]) + params["b1"], 0.0)
    h = jnp.maximum(adj @ (h @ params["w2"]) + params["b2"], 0.0)
    h = adj @ (h @ params["w3"]) + params["b3"]
    pooled = pool @ h
    return jnp.maximum(pooled @ params["w_lin"] + params["b_lin"], 0.0)


def init_params(key, num_node_features, hidden_channels):
    ks = jax.random.split(key, 4)

    def glorot(k, fan_in, fan_out):
        lim = jnp.sqrt(6.0 / (fan_in + fan_out))
        return jax.random.uniform(k, (fan_in, fan_out), jnp.float32, -lim, lim)

    return {
        "w1": glorot(ks[0], num_node_features, hidden_channels),
        "b1": jnp.zeros((hidden_channels,), jnp.float32),
        "w2": glorot(ks[1], hidden_channels, hidden_channels),
        "b2": jnp.zeros((hidden_channels,), jnp.float32),
        "w3": glorot(ks[2], hidden_channels, hidden_channels),
        "b3": jnp.zeros((hidden_channels,), jnp.float32),
        # torch Linear(hidden, 1): weight is [1, hidden]; stored transposed [hidden, 1].
        "w_lin": glorot(ks[3], hidden_channels, 1),
        "b_lin": jnp.zeros((1,), jnp.float32),
    }


if __name__ == "__main__":
    key = jax.random.PRNGKey(0)
    num_node_features = 8
    hidden_channels = 32
    num_nodes = 16
    num_graphs = 2

    k_x, k_p = jax.random.split(key)
    x = jax.random.normal(k_x, (num_nodes, num_node_features), jnp.float32)

    # Two ring graphs of 8 nodes each (undirected edges listed both ways).
    def ring_edges(offset, n):
        src = jnp.arange(n) + offset
        dst = (jnp.arange(n) + 1) % n + offset
        return jnp.stack([jnp.concatenate([src, dst]),
                          jnp.concatenate([dst, src])], axis=0)

    edge_index = jnp.concatenate([ring_edges(0, 8), ring_edges(8, 8)], axis=1)
    batch = jnp.concatenate([jnp.zeros(8, jnp.int32), jnp.ones(8, jnp.int32)])

    params = init_params(k_p, num_node_features, hidden_channels)

    out = gcn_forward(params, x, edge_index, batch, num_graphs)
    out = jax.block_until_ready(out)
    assert out.shape == (num_graphs, 1)

    ref = gcn_forward_ref(params, x, edge_index, batch, num_graphs)
    # bf16 MXU operands -> loose tolerance vs. the f32 reference.
    assert jnp.allclose(out, ref, atol=1e-1, rtol=1e-1), (out, ref)

    print("KERNEL_OK")
</pallas_src>

<mosaic_0001>
module attributes {stable_mosaic.version = 11 : i64} {
  func.func @_fused_gcn_kernel(%arg0: memref<128x128xbf16, #tpu.memory_space<vmem>>, %arg1: memref<8x128xbf16, #tpu.memory_space<vmem>>, %arg2: memref<128x128xbf16, #tpu.memory_space<vmem>>, %arg3: memref<128x128xbf16, #tpu.memory_space<vmem>>, %arg4: memref<1x128xf32, #tpu.memory_space<vmem>>, %arg5: memref<128x128xbf16, #tpu.memory_space<vmem>>, %arg6: memref<1x128xf32, #tpu.memory_space<vmem>>, %arg7: memref<128x128xbf16, #tpu.memory_space<vmem>>, %arg8: memref<1x128xf32, #tpu.memory_space<vmem>>, %arg9: memref<8x128xf32, #tpu.memory_space<vmem>>) attributes {dimension_semantics = [], scalar_prefetch = 0 : i64, scratch_operands = 0 : i64, tpu.core_type = #tpu.core_type<tc>} {
    %c0 = arith.constant 0 : index
    %c0_0 = arith.constant 0 : index
    %0 = vector.load %arg0[%c0, %c0_0] : memref<128x128xbf16, #tpu.memory_space<vmem>>, vector<128x128xbf16>
    %c0_1 = arith.constant 0 : index
    %c0_2 = arith.constant 0 : index
    %1 = vector.load %arg2[%c0_1, %c0_2] : memref<128x128xbf16, #tpu.memory_space<vmem>>, vector<128x128xbf16>
    %c0_3 = arith.constant 0 : index
    %c0_4 = arith.constant 0 : index
    %2 = vector.load %arg3[%c0_3, %c0_4] : memref<128x128xbf16, #tpu.memory_space<vmem>>, vector<128x128xbf16>
    %cst = arith.constant dense<0.000000e+00> : vector<128x128xf32>
    %3 = tpu.matmul %1, %2, %cst {dimension_numbers = #tpu.dot_dimension_numbers<[1], [0], [0], [1], [0, 0, 1, 1], [], []>} : vector<128x128xbf16>, vector<128x128xbf16>, vector<128x128xf32> -> vector<128x128xf32>
    %4 = arith.truncf %3 : vector<128x128xf32> to vector<128x128xbf16>
    %cst_5 = arith.constant dense<0.000000e+00> : vector<128x128xf32>
    %5 = tpu.matmul %0, %4, %cst_5 {dimension_numbers = #tpu.dot_dimension_numbers<[1], [0], [0], [1], [0, 0, 1, 1], [], []>} : vector<128x128xbf16>, vector<128x128xbf16>, vector<128x128xf32> -> vector<128x128xf32>
    %c0_6 = arith.constant 0 : index
    %c0_7 = arith.constant 0 : index
    %6 = vector.load %arg4[%c0_6, %c0_7] : memref<1x128xf32, #tpu.memory_space<vmem>>, vector<1x128xf32>
    %7 = vector.broadcast %6 : vector<1x128xf32> to vector<128x128xf32>
    %8 = arith.addf %5, %7 : vector<128x128xf32>
    %cst_8 = arith.constant 0.000000e+00 : f32
    %9 = vector.broadcast %cst_8 : f32 to vector<128x128xf32>
    %10 = arith.maximumf %8, %9 : vector<128x128xf32>
    %11 = arith.truncf %10 : vector<128x128xf32> to vector<128x128xbf16>
    %c0_9 = arith.constant 0 : index
    %c0_10 = arith.constant 0 : index
    %12 = vector.load %arg5[%c0_9, %c0_10] : memref<128x128xbf16, #tpu.memory_space<vmem>>, vector<128x128xbf16>
    %cst_11 = arith.constant dense<0.000000e+00> : vector<128x128xf32>
    %13 = tpu.matmul %11, %12, %cst_11 {dimension_numbers = #tpu.dot_dimension_numbers<[1], [0], [0], [1], [0, 0, 1, 1], [], []>} : vector<128x128xbf16>, vector<128x128xbf16>, vector<128x128xf32> -> vector<128x128xf32>
    %14 = arith.truncf %13 : vector<128x128xf32> to vector<128x128xbf16>
    %cst_12 = arith.constant dense<0.000000e+00> : vector<128x128xf32>
    %15 = tpu.matmul %0, %14, %cst_12 {dimension_numbers = #tpu.dot_dimension_numbers<[1], [0], [0], [1], [0, 0, 1, 1], [], []>} : vector<128x128xbf16>, vector<128x128xbf16>, vector<128x128xf32> -> vector<128x128xf32>
    %c0_13 = arith.constant 0 : index
    %c0_14 = arith.constant 0 : index
    %16 = vector.load %arg6[%c0_13, %c0_14] : memref<1x128xf32, #tpu.memory_space<vmem>>, vector<1x128xf32>
    %17 = vector.broadcast %16 : vector<1x128xf32> to vector<128x128xf32>
    %18 = arith.addf %15, %17 : vector<128x128xf32>
    %cst_15 = arith.constant 0.000000e+00 : f32
    %19 = vector.broadcast %cst_15 : f32 to vector<128x128xf32>
    %20 = arith.maximumf %18, %19 : vector<128x128xf32>
    %21 = arith.truncf %20 : vector<128x128xf32> to vector<128x128xbf16>
    %c0_16 = arith.constant 0 : index
    %c0_17 = arith.constant 0 : index
    %22 = vector.load %arg7[%c0_16, %c0_17] : memref<128x128xbf16, #tpu.memory_space<vmem>>, vector<128x128xbf16>
    %cst_18 = arith.constant dense<0.000000e+00> : vector<128x128xf32>
    %23 = tpu.matmul %21, %22, %cst_18 {dimension_numbers = #tpu.dot_dimension_numbers<[1], [0], [0], [1], [0, 0, 1, 1], [], []>} : vector<128x128xbf16>, vector<128x128xbf16>, vector<128x128xf32> -> vector<128x128xf32>
    %24 = arith.truncf %23 : vector<128x128xf32> to vector<128x128xbf16>
    %cst_19 = arith.constant dense<0.000000e+00> : vector<128x128xf32>
    %25 = tpu.matmul %0, %24, %cst_19 {dimension_numbers = #tpu.dot_dimension_numbers<[1], [0], [0], [1], [0, 0, 1, 1], [], []>} : vector<128x128xbf16>, vector<128x128xbf16>, vector<128x128xf32> -> vector<128x128xf32>
    %c0_20 = arith.constant 0 : index
    %c0_21 = arith.constant 0 : index
    %26 = vector.load %arg1[%c0_20, %c0_21] : memref<8x128xbf16, #tpu.memory_space<vmem>>, vector<8x128xbf16>
    %27 = arith.truncf %25 : vector<128x128xf32> to vector<128x128xbf16>
    %cst_22 = arith.constant dense<0.000000e+00> : vector<8x128xf32>
    %28 = tpu.matmul %26, %27, %cst_22 {dimension_numbers = #tpu.dot_dimension_numbers<[1], [0], [0], [1], [0, 0, 1, 1], [], []>} : vector<8x128xbf16>, vector<128x128xbf16>, vector<8x128xf32> -> vector<8x128xf32>
    %c0_23 = arith.constant 0 : index
    %c0_24 = arith.constant 0 : index
    %29 = vector.load %arg8[%c0_23, %c0_24] : memref<1x128xf32, #tpu.memory_space<vmem>>, vector<1x128xf32>
    %30 = vector.broadcast %29 : vector<1x128xf32> to vector<8x128xf32>
    %31 = arith.addf %28, %30 : vector<8x128xf32>
    %cst_25 = arith.constant 0.000000e+00 : f32
    %32 = vector.broadcast %cst_25 : f32 to vector<8x128xf32>
    %33 = arith.maximumf %31, %32 : vector<8x128xf32>
    %c0_26 = arith.constant 0 : index
    %c0_27 = arith.constant 0 : index
    %34 = vector.load %arg9[%c0_26, %c0_27] : memref<8x128xf32, #tpu.memory_space<vmem>>, vector<8x128xf32>
    tpu.vector_store %arg9[%c0_26, %c0_27], %33 {strides = array<i32>} : memref<8x128xf32, #tpu.memory_space<vmem>>, vector<8x128xf32>,
    return
  }
}

</mosaic_0001>

<bundles_post_ra>
// kernel: tpu_custom_call.1
= control target key start
LH: loop header
LB: loop body
LE: loop exit
PB: predicated region body
PF: predicated region fallthrough
CT: control target
= control target key end

     0   :  { %14 = vsyncpa [#allocation3], 0  ;;  %s1402_s0 = inlined_call_operand.hbm [shape: bf16[128,128], index: 0, kind: input, shape index: {}]   ;;  %s1403_s1 = inlined_call_operand.hbm [shape: bf16[8,128], index: 1, kind: input, shape index: {}]   ;;  %s1404_s2 = inlined_call_operand.hbm [shape: bf16[128,128], index: 2, kind: input, shape index: {}]   ;;  %s1405_s3 = inlined_call_operand.hbm [shape: bf16[128,128], index: 3, kind: input, shape index: {}]   ;;  %s1406_s4 = inlined_call_operand.vmem [shape: f32[1,128], index: 4, kind: input, shape index: {}]   ;;  %s1407_s5 = inlined_call_operand.hbm [shape: bf16[128,128], index: 5, kind: input, shape index: {}]   ;;  %s1408_s6 = inlined_call_operand.vmem [shape: f32[1,128], index: 6, kind: input, shape index: {}]   ;;  %s1409_s7 = inlined_call_operand.hbm [shape: bf16[128,128], index: 7, kind: input, shape index: {}]   ;;  %s1410_s8 = inlined_call_operand.vmem [shape: f32[1,128], index: 8, kind: input, shape index: {}]   ;;  %s1411_s9 = inlined_call_operand.hbm [shape: f32[8,128], index: 9, kind: output, shape index: {}]  }
   0x1   :  { %15 = vsyncpa [#allocation6], 0 }
   0x2   :  { %16 = vsyncpa [#allocation9], 0 }
   0x3   :  { %17 = vsyncpa [#allocation12], 0  ;;  %s37_s11 = sshll.u32 %s1403_s1, 4  ;;  %s38_s11 = int_to_ptr.hbm [resolvable:$true] %s37_s11 }
   0x4   :  { %18 = vsyncpa [#allocation4], 0  ;;  %s1273_s12 = smov [#allocation5]   ;;  %s60_s16 = sshll.u32 %s1405_s3, 4  ;;  %s61_s16 = int_to_ptr.hbm [resolvable:$true] %s60_s16 }
   0x5   :  { %s39_s13 = sshll.u32 %s1273_s12, 4  ;;  %s1274_s17 = smov [#allocation8]   ;;  %s40_s13 = int_to_ptr.vmem [resolvable:$true] %s39_s13 }
   0x6   :  { %42 = dma.hbm_to_vmem [thread:$0]  %s38_s11, 64, %s40_s13, [#allocation6]  }
   0x7   :  { %s62_s18 = sshll.u32 %s1274_s17, 4  ;;  %s23_s21 = sshll.u32 %s1402_s0, 4  ;;  %s63_s18 = int_to_ptr.vmem [resolvable:$true] %s62_s18  ;;  %s24_s21 = int_to_ptr.hbm [resolvable:$true] %s23_s21 }
   0x8   :  { %s1275_s1 = smov 64   ;;  %s1276_s22 = smov 4  }
   0x9   :  { %68 = dma.hbm_to_vmem [thread:$0]  %s61_s16, 1024, %s63_s18, [#allocation9], %s1275_s1, %s1275_s1, %s1276_s22  }
   0xa   :  { %s47_s25 = sshll.u32 %s1404_s2, 4  ;;  %s1277_s26 = smov [#allocation2]   ;;  %s48_s25 = int_to_ptr.hbm [resolvable:$true] %s47_s25 }
   0xb   :  { %s25_s27 = sshll.u32 %s1277_s26, 4  ;;  %s1278_s3 = smov [#allocation7]   ;;  %s26_s27 = int_to_ptr.vmem [resolvable:$true] %s25_s27 }
   0xc   :  { %31 = dma.hbm_to_vmem [thread:$0]  %s24_s21, 1024, %s26_s27, [#allocation3], %s1275_s1, %s1275_s1, %s1276_s22  }
   0xd   :  { %s49_s28 = sshll.u32 %s1278_s3, 4  ;;  %s75_s0 = sshll.u32 %s1407_s5, 4  ;;  %s50_s28 = int_to_ptr.vmem [resolvable:$true] %s49_s28  ;;  %s76_s0 = int_to_ptr.hbm [resolvable:$true] %s75_s0 }
   0xe   :  { %55 = dma.hbm_to_vmem [thread:$0]  %s48_s25, 1024, %s50_s28, [#allocation6], %s1275_s1, %s1275_s1, %s1276_s22  }
   0xf   :  { %s90_s12 = sshll.u32 %s1409_s7, 4  ;;  %s1279_s13 = smov [#allocation10]   ;;  %s91_s12 = int_to_ptr.hbm [resolvable:$true] %s90_s12 }
  0x10   :  { %s77_s2 = sshll.u32 %s1279_s13, 4  ;;  %s1280_s14 = smov [#allocation11]   ;;  %s78_s2 = int_to_ptr.vmem [resolvable:$true] %s77_s2 }
  0x11   :  { %83 = dma.hbm_to_vmem [thread:$0]  %s76_s0, 1024, %s78_s2, [#allocation9], %s1275_s1, %s1275_s1, %s1276_s22  }
  0x12   :  { %s92_s15 = sshll.u32 %s1280_s14, 4  ;;  %s93_s15 = int_to_ptr.vmem [resolvable:$true] %s92_s15 }
  0x13   :  { %98 = dma.hbm_to_vmem [thread:$0]  %s91_s12, 1024, %s93_s15, [#allocation12], %s1275_s1, %s1275_s1, %s1276_s22  }
  0x14   :  { %1263 = dma.done.wait [#allocation3], 1024  }
  0x15   :  { %1264 = vsyncadd [#allocation3], 4294966272 }
  0x16   :  { %1265 = dma.done.wait [#allocation6], 1088  }
  0x17   :  { %1266 = vsyncadd [#allocation6], 4294966208 }
  0x18   :  { %1267 = dma.done.wait [#allocation9], 2048  }
  0x19   :  { %1268 = vsyncadd [#allocation9], 4294965248 }
  0x1a   :  { %1269 = dma.done.wait [#allocation12], 1024  }
  0x1b   :  { %1270 = vsyncadd [#allocation12], 4294966272  ;;  %v1050_v0 = vld [vmem:[#allocation8 + $0x38] sm:$0xff]  ;;  %v1049_v1 = vld [vmem:[#allocation8 + $0x30] sm:$0xff]  ;;  %s1281_s18 = smov [#allocation13]   ;;  %s854_s1 = sshll.u32 %s1411_s9, 4  ;;  %s855_s1 = int_to_ptr.hbm [resolvable:$true] %s854_s1 }
  0x1c   :  { %269 = vmatpush.bf16.msra.mxu0 %v1050_v0  ;;  %1067 = vmatpush.bf16.msra.mxu3 %v1050_v0  ;;  %v1048_v2 = vld [vmem:[#allocation8 + $0x28] sm:$0xff]  ;;  %v1047_v3 = vld [vmem:[#allocation8 + $0x20] sm:$0xff]  ;;  %v1046_v4 = vld [vmem:[#allocation8 + $0x18] sm:$0xff]  ;;  %s852_s19 = sshll.u32 %s1281_s18, 4  ;;  %s853_s19 = int_to_ptr.vmem [resolvable:$true] %s852_s19 }
  0x1d   :  { %v1045_v5 = vld [vmem:[#allocation8 + $0x10] sm:$0xff]  ;;  %v1044_v6 = vld [vmem:[#allocation8 + $0x8] sm:$0xff]  ;;  %v1043_v7 = vld [vmem:[#allocation8] sm:$0xff] }
  0x1e   :  { %v1035_v8 = vld [vmem:[#allocation7] sm:$0xff]  ;;  %v1040_v9 = vld [vmem:[#allocation7 + $0x28] sm:$0xff]  ;;  %v1041_v11 = vld [vmem:[#allocation7 + $0x30] sm:$0xff] }
  0x1f   :  { %v1036_v10 = vld [vmem:[#allocation7 + $0x8] sm:$0xff]  ;;  %v1037_v12 = vld [vmem:[#allocation7 + $0x10] sm:$0xff]  ;;  %v1042_v13 = vld [vmem:[#allocation7 + $0x38] sm:$0xff] }
  0x20   :  { %270 = vmatpush.bf16.msra.mxu0 %v1049_v1  ;;  %1068 = vmatpush.bf16.msra.mxu3 %v1049_v1  ;;  %v1038_v14 = vld [vmem:[#allocation7 + $0x18] sm:$0xff]  ;;  %v1039_v15 = vld [vmem:[#allocation7 + $0x20] sm:$0xff]  ;;  %v1356_v42 = vld [vmem:[#allocation2 + $0x10] sm:$0xff] }
  0x21   :  { %v1350_v40 = vld [vmem:[#allocation2] sm:$0xff]  ;;  %v1353_v41 = vld [vmem:[#allocation2 + $0x8] sm:$0xff]  ;;  %v1057_v45 = vld [vmem:[#allocation10 + $0x30] sm:$0xff] }
  0x22   :  { %v1359_v43 = vld [vmem:[#allocation2 + $0x28] sm:$0xff]  ;;  %v1058_v44 = vld [vmem:[#allocation10 + $0x38] sm:$0xff]  ;;  %v1364_v49 = vld [vmem:[#allocation2 + $0x30] sm:$0xff] }
  0x23   :  { %v1056_v46 = vld [vmem:[#allocation10 + $0x28] sm:$0xff]  ;;  %v1362_v47 = vld [vmem:[#allocation2 + $0x18] sm:$0xff]  ;;  %v1055_v48 = vld [vmem:[#allocation10 + $0x20] sm:$0xff] }
  0x24   :  { %271 = vmatpush.bf16.msra.mxu0 %v1048_v2  ;;  %1069 = vmatpush.bf16.msra.mxu3 %v1048_v2  ;;  %v1368_v50 = vld [vmem:[#allocation2 + $0x20] sm:$0xff]  ;;  %v1370_v51 = vld [vmem:[#allocation2 + $0x38] sm:$0xff]  ;;  %v1052_v54 = vld [vmem:[#allocation10 + $0x8] sm:$0xff] }
  0x25   :  { %v1054_v52 = vld [vmem:[#allocation10 + $0x18] sm:$0xff]  ;;  %v1053_v53 = vld [vmem:[#allocation10 + $0x10] sm:$0xff]  ;;  %v1051_v55 = vld [vmem:[#allocation10] sm:$0xff] }
  0x26   :  { %v1092_v57 = vld [vmem:[%s1406_s4] ss:$0 sm:$0xff] }
  0x28   :  { %272 = vmatpush.bf16.msra.mxu0 %v1047_v3  ;;  %1070 = vmatpush.bf16.msra.mxu3 %v1047_v3 }
  0x2c   :  { %273 = vmatpush.bf16.msra.mxu0 %v1046_v4  ;;  %1071 = vmatpush.bf16.msra.mxu3 %v1046_v4 }
  0x30   :  { %274 = vmatpush.bf16.msra.mxu0 %v1045_v5  ;;  %1072 = vmatpush.bf16.msra.mxu3 %v1045_v5 }
  0x34   :  { %275 = vmatpush.bf16.msra.mxu0 %v1044_v6  ;;  %1073 = vmatpush.bf16.msra.mxu3 %v1044_v6 }
  0x38   :  { %276 = vmatpush.bf16.msra.mxu0 %v1043_v7  ;;  %1074 = vmatpush.bf16.msra.mxu3 %v1043_v7 }
  0x3b   :  { %277 = vmatmul.bf16.vlgmr.msra.gmra.mxu0 %v1035_v8  ;;  %302 = vmatmul.bf16.vlgmr.msra.gmra.mxu3 %v1040_v9 }
  0x4b   :  { %282 = vmatmul.bf16.gmra.mxu0 %v1036_v10  ;;  %307 = vmatmul.bf16.gmra.mxu3 %v1041_v11 }
  0x5b   :  { %287 = vmatmul.bf16.gmra.mxu0 %v1037_v12  ;;  %312 = vmatmul.bf16.gmra.mxu3 %v1042_v13 }
  0x6b   :  { %292 = vmatmul.bf16.gmra.mxu0 %v1038_v14 }
  0x7b   :  { %297 = vmatmul.bf16.gmra.mxu0 %v1039_v15 }
  0xb8   :  { %v278_v16 = vpop.f32.mrf.mxu0 }
  0xbe   :  { %v303_v17 = vpop.f32.mrf.mxu3 }
  0xc0   :  { %v280_v18 = vpop.f32.mrf.mxu0 }
  0xc1   :  { %v318_v39 = vpack.c.bf16 %v280_v18, %v278_v16 }
  0xc6   :  { %v305_v19 = vpop.f32.mrf.mxu3 }
  0xc7   :  { %v323_v31 = vpack.c.bf16 %v305_v19, %v303_v17 }
  0xc8   :  { %v283_v20 = vpop.f32.mrf.mxu0 }
  0xce   :  { %v308_v21 = vpop.f32.mrf.mxu3 }
  0xd0   :  { %v285_v22 = vpop.f32.mrf.mxu0 }
  0xd1   :  { %v319_v38 = vpack.c.bf16 %v285_v22, %v283_v20 }
  0xd6   :  { %v310_v23 = vpop.f32.mrf.mxu3 }
  0xd7   :  { %v324_v30 = vpack.c.bf16 %v310_v23, %v308_v21 }
  0xd8   :  { %v288_v24 = vpop.f32.mrf.mxu0 }
  0xde   :  { %v313_v25 = vpop.f32.mrf.mxu3 }
  0xe0   :  { %v290_v26 = vpop.f32.mrf.mxu0 }
  0xe1   :  { %v320_v37 = vpack.c.bf16 %v290_v26, %v288_v24 }
  0xe6   :  { %v315_v27 = vpop.f32.mrf.mxu3 }
  0xe7   :  { %v325_v28 = vpack.c.bf16 %v315_v27, %v313_v25 }
  0xe8   :  { %v293_v29 = vpop.f32.mrf.mxu0 }
  0xe9   :  { %378 = vmatpush.bf16.msra.mxu1 %v325_v28  ;;  %1075 = vmatpush.bf16.msra.mxu2 %v325_v28 }
  0xed   :  { %379 = vmatpush.bf16.msra.mxu1 %v324_v30  ;;  %1076 = vmatpush.bf16.msra.mxu2 %v324_v30 }
  0xf0   :  { %v295_v32 = vpop.f32.mrf.mxu0 }
  0xf1   :  { %380 = vmatpush.bf16.msra.mxu1 %v323_v31  ;;  %1077 = vmatpush.bf16.msra.mxu2 %v323_v31  ;;  %v321_v36 = vpack.c.bf16 %v295_v32, %v293_v29 }
  0xf8   :  { %v298_v33 = vpop.f32.mrf.mxu0 }
 0x100   :  { %v300_v34 = vpop.f32.mrf.mxu0 }
 0x101   :  { %v322_v35 = vpack.c.bf16 %v300_v34, %v298_v33 }
 0x103   :  { %381 = vmatpush.bf16.msra.mxu1 %v322_v35  ;;  %1078 = vmatpush.bf16.msra.mxu2 %v322_v35 }
 0x107   :  { %382 = vmatpush.bf16.msra.mxu1 %v321_v36  ;;  %1079 = vmatpush.bf16.msra.mxu2 %v321_v36 }
 0x10b   :  { %383 = vmatpush.bf16.msra.mxu1 %v320_v37  ;;  %1080 = vmatpush.bf16.msra.mxu2 %v320_v37 }
 0x10f   :  { %384 = vmatpush.bf16.msra.mxu1 %v319_v38  ;;  %1081 = vmatpush.bf16.msra.mxu2 %v319_v38 }
 0x113   :  { %385 = vmatpush.bf16.msra.mxu1 %v318_v39  ;;  %1082 = vmatpush.bf16.msra.mxu2 %v318_v39 }
 0x116   :  { %386 = vmatmul.bf16.vlgmr.msra.gmra.mxu1 %v1350_v40  ;;  %411 = vmatmul.bf16.vlgmr.msra.gmra.mxu2 %v1359_v43 }
 0x117   :  { %515 = vmatpush.bf16.msrb.mxu2 %v1058_v44 }
 0x11b   :  { %516 = vmatpush.bf16.msrb.mxu2 %v1057_v45 }
 0x11f   :  { %517 = vmatpush.bf16.msrb.mxu2 %v1056_v46 }
 0x123   :  { %518 = vmatpush.bf16.msrb.mxu2 %v1055_v48 }
 0x126   :  { %391 = vmatmul.bf16.gmra.mxu1 %v1353_v41  ;;  %416 = vmatmul.bf16.gmra.mxu2 %v1364_v49 }
 0x127   :  { %519 = vmatpush.bf16.msrb.mxu2 %v1054_v52 }
 0x12b   :  { %520 = vmatpush.bf16.msrb.mxu2 %v1053_v53 }
 0x12f   :  { %521 = vmatpush.bf16.msrb.mxu2 %v1052_v54 }
 0x133   :  { %522 = vmatpush.bf16.msrb.mxu2 %v1051_v55 }
 0x136   :  { %396 = vmatmul.bf16.gmra.mxu1 %v1356_v42  ;;  %421 = vmatmul.bf16.gmra.mxu2 %v1370_v51 }
 0x146   :  { %401 = vmatmul.bf16.gmra.mxu1 %v1362_v47 }
 0x156   :  { %406 = vmatmul.bf16.gmra.mxu1 %v1368_v50 }
 0x193   :  { %v387_v56 = vpop.f32.mrf.mxu1 }
 0x194   :  { %v388_v58 = vadd.f32 %v1092_v57, %v387_v56 }
 0x196   :  { %v427_v61 = vmax.f32 %v388_v58, 0.0 }
 0x199   :  { %v412_v22 = vpop.f32.mrf.mxu2 }
 0x19a   :  { %v413_v31 = vadd.f32 %v1092_v57, %v412_v22  ;;  %v1061_v22 = vld [vmem:[#allocation11 + $0x10] sm:$0xff] }
 0x19b   :  { %v389_v59 = vpop.f32.mrf.mxu1 }
 0x19c   :  { %v390_v60 = vadd.f32 %v1092_v57, %v389_v59  ;;  %v437_v33 = vmax.f32 %v413_v31, 0.0 }
 0x19e   :  { %v428_v62 = vmax.f32 %v390_v60, 0.0 }
 0x1a0   :  { %v443_v63 = vpack.c.bf16 %v428_v62, %v427_v61 }
 0x1a1   :  { %v414_v26 = vpop.f32.mrf.mxu2 }
 0x1a2   :  { %523 = vmatmul.bf16.vlgmr.msrb.gmra.mxu2 %v443_v63  ;;  %v415_v32 = vadd.f32 %v1092_v57, %v414_v26  ;;  %v1093_v26 = vld [vmem:[%s1408_s6] ss:$0 sm:$0xff] }
 0x1a3   :  { %v392_v0 = vpop.f32.mrf.mxu1 }
 0x1a4   :  { %v393_v1 = vadd.f32 %v1092_v57, %v392_v0  ;;  %v438_v34 = vmax.f32 %v415_v32, 0.0 }
 0x1a6   :  { %v429_v4 = vmax.f32 %v393_v1, 0.0  ;;  %v448_v35 = vpack.c.bf16 %v438_v34, %v437_v33 }
 0x1a9   :  { %v417_v30 = vpop.f32.mrf.mxu2 }
 0x1aa   :  { %v418_v37 = vadd.f32 %v1092_v57, %v417_v30 }
 0x1ab   :  { %v394_v2 = vpop.f32.mrf.mxu1 }
 0x1ac   :  { %v395_v3 = vadd.f32 %v1092_v57, %v394_v2  ;;  %v439_v44 = vmax.f32 %v418_v37, 0.0 }
 0x1ae   :  { %v430_v5 = vmax.f32 %v395_v3, 0.0 }
 0x1b0   :  { %v444_v6 = vpack.c.bf16 %v430_v5, %v429_v4 }
 0x1b1   :  { %v419_v36 = vpop.f32.mrf.mxu2 }
 0x1b2   :  { %528 = vmatmul.bf16.gmra.mxu2 %v444_v6  ;;  %v420_v38 = vadd.f32 %v1092_v57, %v419_v36 }
 0x1b3   :  { %v397_v7 = vpop.f32.mrf.mxu1 }
 0x1b4   :  { %v398_v8 = vadd.f32 %v1092_v57, %v397_v7  ;;  %v440_v45 = vmax.f32 %v420_v38, 0.0 }
 0x1b6   :  { %v431_v11 = vmax.f32 %v398_v8, 0.0  ;;  %v449_v46 = vpack.c.bf16 %v440_v45, %v439_v44 }
 0x1b9   :  { %v422_v39 = vpop.f32.mrf.mxu2 }
 0x1ba   :  { %v423_v52 = vadd.f32 %v1092_v57, %v422_v39 }
 0x1bb   :  { %v399_v9 = vpop.f32.mrf.mxu1 }
 0x1bc   :  { %v400_v10 = vadd.f32 %v1092_v57, %v399_v9  ;;  %v441_v54 = vmax.f32 %v423_v52, 0.0 }
 0x1be   :  { %v432_v12 = vmax.f32 %v400_v10, 0.0 }
 0x1c0   :  { %v445_v13 = vpack.c.bf16 %v432_v12, %v431_v11 }
 0x1c1   :  { %v424_v48 = vpop.f32.mrf.mxu2 }
 0x1c2   :  { %533 = vmatmul.bf16.gmra.mxu2 %v445_v13  ;;  %v425_v53 = vadd.f32 %v1092_v57, %v424_v48 }
 0x1c3   :  { %v402_v14 = vpop.f32.mrf.mxu1 }
 0x1c4   :  { %v403_v15 = vadd.f32 %v1092_v57, %v402_v14  ;;  %v442_v55 = vmax.f32 %v425_v53, 0.0 }
 0x1c6   :  { %v433_v18 = vmax.f32 %v403_v15, 0.0  ;;  %v450_v56 = vpack.c.bf16 %v442_v55, %v441_v54 }
 0x1cb   :  { %v404_v16 = vpop.f32.mrf.mxu1 }
 0x1cc   :  { %v405_v17 = vadd.f32 %v1092_v57, %v404_v16 }
 0x1ce   :  { %v434_v19 = vmax.f32 %v405_v17, 0.0  ;;  %v1066_v17 = vld [vmem:[#allocation11 + $0x38] sm:$0xff] }
 0x1cf   :  { %713 = vmatpush.bf16.msrb.mxu0 %v1066_v17 }
 0x1d0   :  { %v446_v20 = vpack.c.bf16 %v434_v19, %v433_v18  ;;  %v1065_v18 = vld [vmem:[#allocation11 + $0x30] sm:$0xff]  ;;  %v1064_v19 = vld [vmem:[#allocation11 + $0x28] sm:$0xff] }
 0x1d2   :  { %538 = vmatmul.bf16.gmra.mxu2 %v446_v20  ;;  %v1063_v20 = vld [vmem:[#allocation11 + $0x20] sm:$0xff] }
 0x1d3   :  { %v407_v21 = vpop.f32.mrf.mxu1  ;;  %714 = vmatpush.bf16.msrb.mxu0 %v1065_v18 }
 0x1d4   :  { %v408_v23 = vadd.f32 %v1092_v57, %v407_v21  ;;  %v1062_v21 = vld [vmem:[#allocation11 + $0x18] sm:$0xff] }
 0x1d6   :  { %v435_v27 = vmax.f32 %v408_v23, 0.0  ;;  %v1060_v23 = vld [vmem:[#allocation11 + $0x8] sm:$0xff] }
 0x1d7   :  { %715 = vmatpush.bf16.msrb.mxu0 %v1064_v19 }
 0x1db   :  { %v409_v24 = vpop.f32.mrf.mxu1  ;;  %716 = vmatpush.bf16.msrb.mxu0 %v1063_v20 }
 0x1dc   :  { %v410_v25 = vadd.f32 %v1092_v57, %v409_v24  ;;  %v1059_v24 = vld [vmem:[#allocation11] sm:$0xff] }
 0x1de   :  { %v436_v28 = vmax.f32 %v410_v25, 0.0 }
 0x1df   :  { %717 = vmatpush.bf16.msrb.mxu0 %v1062_v21 }
 0x1e0   :  { %v447_v29 = vpack.c.bf16 %v436_v28, %v435_v27 }
 0x1e2   :  { %543 = vmatmul.bf16.gmra.mxu2 %v447_v29 }
 0x1e3   :  { %718 = vmatpush.bf16.msrb.mxu0 %v1061_v22 }
 0x1e7   :  { %719 = vmatpush.bf16.msrb.mxu0 %v1060_v23 }
 0x1eb   :  { %720 = vmatpush.bf16.msrb.mxu0 %v1059_v24 }
 0x1f2   :  { %548 = vmatmul.bf16.gmra.mxu2 %v448_v35 }
 0x202   :  { %553 = vmatmul.bf16.gmra.mxu2 %v449_v46 }
 0x212   :  { %558 = vmatmul.bf16.gmra.mxu2 %v450_v56 }
 0x225   :  { %v524_v58 = vpop.f32.mrf.mxu2 }
 0x22d   :  { %v526_v59 = vpop.f32.mrf.mxu2 }
 0x22e   :  { %v564_v60 = vpack.c.bf16 %v526_v59, %v524_v58 }
 0x235   :  { %v529_v61 = vpop.f32.mrf.mxu2 }
 0x23d   :  { %v531_v62 = vpop.f32.mrf.mxu2 }
 0x23e   :  { %v565_v63 = vpack.c.bf16 %v531_v62, %v529_v61 }
 0x245   :  { %v534_v0 = vpop.f32.mrf.mxu2 }
 0x24d   :  { %v536_v1 = vpop.f32.mrf.mxu2 }
 0x24e   :  { %v566_v2 = vpack.c.bf16 %v536_v1, %v534_v0 }
 0x255   :  { %v539_v3 = vpop.f32.mrf.mxu2 }
 0x25d   :  { %v541_v4 = vpop.f32.mrf.mxu2 }
 0x25e   :  { %v567_v5 = vpack.c.bf16 %v541_v4, %v539_v3 }
 0x265   :  { %v544_v6 = vpop.f32.mrf.mxu2 }
 0x26d   :  { %v546_v7 = vpop.f32.mrf.mxu2 }
 0x26e   :  { %v568_v16 = vpack.c.bf16 %v546_v7, %v544_v6 }
 0x275   :  { %v549_v8 = vpop.f32.mrf.mxu2 }
 0x27d   :  { %v551_v57 = vpop.f32.mrf.mxu2 }
 0x27e   :  { %v569_v15 = vpack.c.bf16 %v551_v57, %v549_v8 }
 0x285   :  { %v554_v9 = vpop.f32.mrf.mxu2 }
 0x28d   :  { %v556_v10 = vpop.f32.mrf.mxu2 }
 0x28e   :  { %v570_v14 = vpack.c.bf16 %v556_v10, %v554_v9 }
 0x295   :  { %v559_v11 = vpop.f32.mrf.mxu2 }
 0x29d   :  { %v561_v12 = vpop.f32.mrf.mxu2 }
 0x29e   :  { %v571_v13 = vpack.c.bf16 %v561_v12, %v559_v11 }
 0x2a0   :  { %576 = vmatpush.bf16.msrb.mxu3 %v571_v13 }
 0x2a4   :  { %577 = vmatpush.bf16.msrb.mxu3 %v570_v14 }
 0x2a8   :  { %578 = vmatpush.bf16.msrb.mxu3 %v569_v15 }
 0x2ac   :  { %579 = vmatpush.bf16.msrb.mxu3 %v568_v16 }
 0x2b0   :  { %580 = vmatpush.bf16.msrb.mxu3 %v567_v5 }
 0x2b4   :  { %581 = vmatpush.bf16.msrb.mxu3 %v566_v2 }
 0x2b8   :  { %582 = vmatpush.bf16.msrb.mxu3 %v565_v63 }
 0x2bc   :  { %583 = vmatpush.bf16.msrb.mxu3 %v564_v60 }
 0x2bf   :  { %584 = vmatmul.bf16.vlgmr.msrb.gmra.mxu3 %v1350_v40 }
 0x2cf   :  { %589 = vmatmul.bf16.gmra.mxu3 %v1353_v41 }
 0x2df   :  { %594 = vmatmul.bf16.gmra.mxu3 %v1356_v42 }
 0x2ef   :  { %599 = vmatmul.bf16.gmra.mxu3 %v1362_v47 }
 0x2ff   :  { %604 = vmatmul.bf16.gmra.mxu3 %v1368_v50 }
 0x30f   :  { %609 = vmatmul.bf16.gmra.mxu3 %v1359_v43 }
 0x31f   :  { %614 = vmatmul.bf16.gmra.mxu3 %v1364_v49 }
 0x32f   :  { %619 = vmatmul.bf16.gmra.mxu3 %v1370_v51 }
 0x342   :  { %v585_v25 = vpop.f32.mrf.mxu3 }
 0x343   :  { %v586_v27 = vadd.f32 %v1093_v26, %v585_v25 }
 0x345   :  { %v625_v30 = vmax.f32 %v586_v27, 0.0 }
 0x34a   :  { %v587_v28 = vpop.f32.mrf.mxu3 }
 0x34b   :  { %v588_v29 = vadd.f32 %v1093_v26, %v587_v28 }
 0x34d   :  { %v626_v31 = vmax.f32 %v588_v29, 0.0 }
 0x34f   :  { %v641_v32 = vpack.c.bf16 %v626_v31, %v625_v30 }
 0x351   :  { %721 = vmatmul.bf16.vlgmr.msrb.gmra.mxu0 %v641_v32 }
 0x352   :  { %v590_v33 = vpop.f32.mrf.mxu3 }
 0x353   :  { %v591_v34 = vadd.f32 %v1093_v26, %v590_v33 }
 0x355   :  { %v627_v37 = vmax.f32 %v591_v34, 0.0 }
 0x35a   :  { %v592_v35 = vpop.f32.mrf.mxu3 }
 0x35b   :  { %v593_v36 = vadd.f32 %v1093_v26, %v592_v35 }
 0x35d   :  { %v628_v38 = vmax.f32 %v593_v36, 0.0 }
 0x35f   :  { %v642_v39 = vpack.c.bf16 %v628_v38, %v627_v37 }
 0x361   :  { %726 = vmatmul.bf16.gmra.mxu0 %v642_v39 }
 0x362   :  { %v595_v44 = vpop.f32.mrf.mxu3 }
 0x363   :  { %v596_v45 = vadd.f32 %v1093_v26, %v595_v44 }
 0x365   :  { %v629_v52 = vmax.f32 %v596_v45, 0.0 }
 0x36a   :  { %v597_v46 = vpop.f32.mrf.mxu3 }
 0x36b   :  { %v598_v48 = vadd.f32 %v1093_v26, %v597_v46 }
 0x36d   :  { %v630_v53 = vmax.f32 %v598_v48, 0.0 }
 0x36f   :  { %v643_v54 = vpack.c.bf16 %v630_v53, %v629_v52 }
 0x371   :  { %731 = vmatmul.bf16.gmra.mxu0 %v643_v54 }
 0x372   :  { %v600_v55 = vpop.f32.mrf.mxu3 }
 0x373   :  { %v601_v56 = vadd.f32 %v1093_v26, %v600_v55 }
 0x375   :  { %v631_v60 = vmax.f32 %v601_v56, 0.0 }
 0x37a   :  { %v602_v58 = vpop.f32.mrf.mxu3 }
 0x37b   :  { %v603_v59 = vadd.f32 %v1093_v26, %v602_v58 }
 0x37d   :  { %v632_v61 = vmax.f32 %v603_v59, 0.0 }
 0x37f   :  { %v644_v62 = vpack.c.bf16 %v632_v61, %v631_v60 }
 0x381   :  { %736 = vmatmul.bf16.gmra.mxu0 %v644_v62 }
 0x382   :  { %v605_v63 = vpop.f32.mrf.mxu3 }
 0x383   :  { %v606_v0 = vadd.f32 %v1093_v26, %v605_v63 }
 0x385   :  { %v633_v3 = vmax.f32 %v606_v0, 0.0 }
 0x38a   :  { %v607_v1 = vpop.f32.mrf.mxu3 }
 0x38b   :  { %v608_v2 = vadd.f32 %v1093_v26, %v607_v1 }
 0x38d   :  { %v634_v4 = vmax.f32 %v608_v2, 0.0 }
 0x38f   :  { %v645_v5 = vpack.c.bf16 %v634_v4, %v633_v3 }
 0x391   :  { %741 = vmatmul.bf16.gmra.mxu0 %v645_v5 }
 0x392   :  { %v610_v6 = vpop.f32.mrf.mxu3 }
 0x393   :  { %v611_v7 = vadd.f32 %v1093_v26, %v610_v6 }
 0x395   :  { %v635_v9 = vmax.f32 %v611_v7, 0.0 }
 0x39a   :  { %v612_v8 = vpop.f32.mrf.mxu3 }
 0x39b   :  { %v613_v57 = vadd.f32 %v1093_v26, %v612_v8 }
 0x39d   :  { %v636_v10 = vmax.f32 %v613_v57, 0.0 }
 0x39f   :  { %v646_v11 = vpack.c.bf16 %v636_v10, %v635_v9  ;;  %v819_v10 = vld [vmem:[#allocation5] sm:$0xf] }
 0x3a1   :  { %746 = vmatmul.bf16.gmra.mxu0 %v646_v11  ;;  %v1094_v11 = vld [vmem:[%s1410_s8] ss:$0 sm:$0xff] }
 0x3a2   :  { %v615_v12 = vpop.f32.mrf.mxu3 }
 0x3a3   :  { %v616_v13 = vadd.f32 %v1093_v26, %v615_v12 }
 0x3a5   :  { %v637_v16 = vmax.f32 %v616_v13, 0.0 }
 0x3aa   :  { %v617_v14 = vpop.f32.mrf.mxu3 }
 0x3ab   :  { %v618_v15 = vadd.f32 %v1093_v26, %v617_v14 }
 0x3ad   :  { %v638_v17 = vmax.f32 %v618_v15, 0.0 }
 0x3af   :  { %v647_v18 = vpack.c.bf16 %v638_v17, %v637_v16 }
 0x3b1   :  { %751 = vmatmul.bf16.gmra.mxu0 %v647_v18 }
 0x3b2   :  { %v620_v19 = vpop.f32.mrf.mxu3 }
 0x3b3   :  { %v621_v20 = vadd.f32 %v1093_v26, %v620_v19 }
 0x3b5   :  { %v639_v23 = vmax.f32 %v621_v20, 0.0 }
 0x3ba   :  { %v622_v21 = vpop.f32.mrf.mxu3 }
 0x3bb   :  { %v623_v22 = vadd.f32 %v1093_v26, %v622_v21 }
 0x3bd   :  { %v640_v24 = vmax.f32 %v623_v22, 0.0 }
 0x3bf   :  { %v648_v25 = vpack.c.bf16 %v640_v24, %v639_v23 }
 0x3c1   :  { %756 = vmatmul.bf16.gmra.mxu0 %v648_v25 }
 0x3ce   :  { %v722_v27 = vpop.f32.mrf.mxu0 }
 0x3d6   :  { %v724_v28 = vpop.f32.mrf.mxu0 }
 0x3d7   :  { %v762_v29 = vpack.c.bf16 %v724_v28, %v722_v27 }
 0x3de   :  { %v727_v30 = vpop.f32.mrf.mxu0 }
 0x3e6   :  { %v729_v31 = vpop.f32.mrf.mxu0 }
 0x3e7   :  { %v763_v32 = vpack.c.bf16 %v729_v31, %v727_v30 }
 0x3ee   :  { %v732_v33 = vpop.f32.mrf.mxu0 }
 0x3f6   :  { %v734_v34 = vpop.f32.mrf.mxu0 }
 0x3f7   :  { %v764_v35 = vpack.c.bf16 %v734_v34, %v732_v33 }
 0x3fe   :  { %v737_v36 = vpop.f32.mrf.mxu0 }
 0x406   :  { %v739_v37 = vpop.f32.mrf.mxu0 }
 0x407   :  { %v765_v38 = vpack.c.bf16 %v739_v37, %v737_v36 }
 0x40e   :  { %v742_v39 = vpop.f32.mrf.mxu0 }
 0x416   :  { %v744_v44 = vpop.f32.mrf.mxu0 }
 0x417   :  { %v766_v58 = vpack.c.bf16 %v744_v44, %v742_v39 }
 0x41e   :  { %v747_v45 = vpop.f32.mrf.mxu0 }
 0x426   :  { %v749_v26 = vpop.f32.mrf.mxu0 }
 0x427   :  { %v767_v56 = vpack.c.bf16 %v749_v26, %v747_v45 }
 0x42e   :  { %v752_v46 = vpop.f32.mrf.mxu0 }
 0x436   :  { %v754_v48 = vpop.f32.mrf.mxu0 }
 0x437   :  { %v768_v55 = vpack.c.bf16 %v754_v48, %v752_v46 }
 0x43e   :  { %v757_v52 = vpop.f32.mrf.mxu0 }
 0x446   :  { %v759_v53 = vpop.f32.mrf.mxu0 }
 0x447   :  { %v769_v54 = vpack.c.bf16 %v759_v53, %v757_v52 }
 0x449   :  { %770 = vmatpush.bf16.msrb.mxu1 %v769_v54 }
 0x44d   :  { %771 = vmatpush.bf16.msrb.mxu1 %v768_v55 }
 0x451   :  { %772 = vmatpush.bf16.msrb.mxu1 %v767_v56 }
 0x455   :  { %773 = vmatpush.bf16.msrb.mxu1 %v766_v58 }
 0x459   :  { %774 = vmatpush.bf16.msrb.mxu1 %v765_v38 }
 0x45d   :  { %775 = vmatpush.bf16.msrb.mxu1 %v764_v35 }
 0x461   :  { %776 = vmatpush.bf16.msrb.mxu1 %v763_v32 }
 0x465   :  { %777 = vmatpush.bf16.msrb.mxu1 %v762_v29 }
 0x468   :  { %778 = vmatmul.bf16.vlgmr.msrb.gmra.mxu1 %v1350_v40 }
 0x478   :  { %783 = vmatmul.bf16.gmra.mxu1 %v1353_v41 }
 0x488   :  { %788 = vmatmul.bf16.gmra.mxu1 %v1356_v42 }
 0x498   :  { %793 = vmatmul.bf16.gmra.mxu1 %v1362_v47 }
 0x4a8   :  { %798 = vmatmul.bf16.gmra.mxu1 %v1368_v50 }
 0x4b8   :  { %803 = vmatmul.bf16.gmra.mxu1 %v1359_v43 }
 0x4c8   :  { %808 = vmatmul.bf16.gmra.mxu1 %v1364_v49 }
 0x4d8   :  { %813 = vmatmul.bf16.gmra.mxu1 %v1370_v51 }
 0x4e5   :  { %v779_v59 = vpop.f32.mrf.mxu1 }
 0x4ed   :  { %v781_v60 = vpop.f32.mrf.mxu1 }
 0x4ee   :  { %v820_v61 = vpack.c.bf16 %v781_v60, %v779_v59 }
 0x4f5   :  { %v784_v62 = vpop.f32.mrf.mxu1 }
 0x4fd   :  { %v786_v63 = vpop.f32.mrf.mxu1 }
 0x4fe   :  { %v821_v40 = vpack.c.bf16 %v786_v63, %v784_v62 }
 0x505   :  { %v789_v0 = vpop.f32.mrf.mxu1 }
 0x50d   :  { %v791_v41 = vpop.f32.mrf.mxu1 }
 0x50e   :  { %v822_v1 = vpack.c.bf16 %v791_v41, %v789_v0 }
 0x515   :  { %v794_v42 = vpop.f32.mrf.mxu1 }
 0x51d   :  { %v796_v2 = vpop.f32.mrf.mxu1 }
 0x51e   :  { %v823_v47 = vpack.c.bf16 %v796_v2, %v794_v42 }
 0x525   :  { %v799_v3 = vpop.f32.mrf.mxu1 }
 0x52d   :  { %v801_v50 = vpop.f32.mrf.mxu1 }
 0x52e   :  { %v824_v9 = vpack.c.bf16 %v801_v50, %v799_v3 }
 0x535   :  { %v804_v4 = vpop.f32.mrf.mxu1 }
 0x53d   :  { %v806_v43 = vpop.f32.mrf.mxu1 }
 0x53e   :  { %v825_v57 = vpack.c.bf16 %v806_v43, %v804_v4 }
 0x545   :  { %v809_v5 = vpop.f32.mrf.mxu1 }
 0x54d   :  { %v811_v49 = vpop.f32.mrf.mxu1 }
 0x54e   :  { %v826_v8 = vpack.c.bf16 %v811_v49, %v809_v5 }
 0x555   :  { %v814_v6 = vpop.f32.mrf.mxu1 }
 0x55d   :  { %v816_v51 = vpop.f32.mrf.mxu1 }
 0x55e   :  { %v827_v7 = vpack.c.bf16 %v816_v51, %v814_v6 }
 0x560   :  { %832 = vmatpush.bf16.msra.mxu2 %v827_v7 }
 0x564   :  { %833 = vmatpush.bf16.msra.mxu2 %v826_v8 }
 0x568   :  { %834 = vmatpush.bf16.msra.mxu2 %v825_v57 }
 0x56c   :  { %835 = vmatpush.bf16.msra.mxu2 %v824_v9 }
 0x570   :  { %836 = vmatpush.bf16.msra.mxu2 %v823_v47 }
 0x574   :  { %837 = vmatpush.bf16.msra.mxu2 %v822_v1 }
 0x578   :  { %838 = vmatpush.bf16.msra.mxu2 %v821_v40 }
 0x57c   :  { %839 = vmatpush.bf16.msra.mxu2 %v820_v61 }
 0x57f   :  { %840 = vmatmul.bf16.vlgmr.msra.gmra.mxu2 %v819_v10 }
 0x602   :  { %v841_v12 = vpop.f32.mrf.mxu2 }
 0x603   :  { %v842_v13 = vadd.f32 %v1094_v11, %v841_v12 }
 0x605   :  { %v845_v14 = vmax.f32 %v842_v13, 0.0 }
 0x607   :  { %846 = vst [vmem:[#allocation13] sm:$0xff] %v845_v14 }
 0x608   :  { %857 = dma.vmem_to_hbm [thread:$0]  %s853_s19, 128, %s855_s1, [#allocation4]  }
 0x60a   :  { %v843_v15 = vpop.f32.mrf.mxu2 }
 0x60b   :  { %1271 = dma.done.wait [#allocation4], 128  }
 0x60c   :  { %1272 = vsyncadd [#allocation4], 4294967168 }
 0x60d   :  { %862 = vsyncpa [#allocation3], 1 }
 0x60e   :  { %863 = vsyncpa [#allocation6], 1 }
 0x60f   :  { %864 = vsyncpa [#allocation9], 1 }
 0x610   :  { %865 = vsyncpa [#allocation12], 1 }
 0x611   :  { %866 = vsyncpa [#allocation4], 1 }

</bundles_post_ra>
